<compile_context>
chip_gen: v7x
topology: tpu7x:2x2x1
jax: 0.10.0
libtpu: 0.0.40
codegen_flags: <defaults>
</compile_context>

<pallas_src>
import jax
import jax.numpy as jnp
from jax.experimental import pallas as pl
from jax.experimental.pallas import tpu as pltpu

IN_FEATURES = 15
HIDDEN = 4
OUT_FEATURES = 2


def _net1_kernel(x_ref, w1_ref, b1_ref, w2_ref, b2_ref, o_ref):
    # x_ref:  (TB, 15)  compute dtype (bf16 or f32)
    # w1_ref: (15, 4)   compute dtype,  b1_ref: (1, 4) f32
    # w2_ref: (4, 2)    compute dtype,  b2_ref: (1, 2) f32
    # o_ref:  (TB, 2)   f32
    x = x_ref[...]
    # Linear(15 -> 4) + ReLU, f32 accumulation on the MXU.
    h = jnp.dot(x, w1_ref[...], preferred_element_type=jnp.float32) + b1_ref[...]
    h = jnp.maximum(h, 0.0)
    # Linear(4 -> 2), f32 accumulation.
    h = h.astype(w2_ref.dtype)
    y = jnp.dot(h, w2_ref[...], preferred_element_type=jnp.float32) + b2_ref[...]
    o_ref[...] = y.astype(o_ref.dtype)


def _net1_jax(x, w1, b1, w2, b2):
    """Plain-XLA path for tiny batches (pallas launch overhead not worth it)."""
    h = jnp.maximum(
        jnp.dot(x, w1, preferred_element_type=jnp.float32) + b1, 0.0
    )
    return jnp.dot(h, w2, preferred_element_type=jnp.float32) + b2


def net1_forward_pallas(x, w1, b1, w2, b2, *, block_b=1024,
                        compute_dtype=jnp.bfloat16):
    """x: (B, 15). Weights stored as (in, out). Returns (B, 2) f32."""
    B, K = x.shape
    assert K == IN_FEATURES

    # Pick a valid batch tile: second-minor block dim must be a multiple of 8
    # or equal to the full batch dim.
    if block_b >= B:
        tb = B
    else:
        tb = max(8, (block_b // 8) * 8)
    grid = (pl.cdiv(B, tb),)

    # Cast inputs/weights to the compute dtype at the boundary (bandwidth win);
    # keep biases in f32 for the f32-accumulated add.
    xc = x.astype(compute_dtype)
    w1c = w1.astype(compute_dtype)
    w2c = w2.astype(compute_dtype)
    b1c = b1.reshape(1, HIDDEN).astype(jnp.float32)
    b2c = b2.reshape(1, OUT_FEATURES).astype(jnp.float32)

    flops = 2 * B * (IN_FEATURES * HIDDEN + HIDDEN * OUT_FEATURES)
    bytes_accessed = (
        B * IN_FEATURES * xc.dtype.itemsize          # x read
        + B * OUT_FEATURES * 4                       # y write (f32)
        + w1c.size * w1c.dtype.itemsize
        + w2c.size * w2c.dtype.itemsize
        + b1c.size * 4 + b2c.size * 4
    )

    return pl.pallas_call(
        _net1_kernel,
        out_shape=jax.ShapeDtypeStruct((B, OUT_FEATURES), jnp.float32),
        grid=grid,
        in_specs=[
            pl.BlockSpec((tb, IN_FEATURES), lambda i: (i, 0)),
            pl.BlockSpec((IN_FEATURES, HIDDEN), lambda i: (0, 0)),
            pl.BlockSpec((1, HIDDEN), lambda i: (0, 0)),
            pl.BlockSpec((HIDDEN, OUT_FEATURES), lambda i: (0, 0)),
            pl.BlockSpec((1, OUT_FEATURES), lambda i: (0, 0)),
        ],
        out_specs=pl.BlockSpec((tb, OUT_FEATURES), lambda i: (i, 0)),
        compiler_params=pltpu.CompilerParams(
            dimension_semantics=("parallel",),
        ),
        cost_estimate=pl.CostEstimate(
            flops=flops, transcendentals=0, bytes_accessed=bytes_accessed
        ),
    )(xc, w1c, b1c, w2c, b2c)


def net1_forward(x, w1, b1, w2, b2, *, min_pallas_batch=4096, **kwargs):
    """Dispatcher: tiny batches go straight to XLA; big batches use Pallas."""
    if x.shape[0] < min_pallas_batch:
        return _net1_jax(
            x, w1, b1.reshape(1, HIDDEN), w2, b2.reshape(1, OUT_FEATURES)
        )
    return net1_forward_pallas(x, w1, b1, w2, b2, **kwargs)


def init_params(key):
    """Deterministic init mimicking nn.Linear's uniform(-1/sqrt(fan_in), +)."""
    k1, k2, k3, k4 = jax.random.split(key, 4)
    lim1 = 1.0 / jnp.sqrt(float(IN_FEATURES))
    lim2 = 1.0 / jnp.sqrt(float(HIDDEN))
    # Stored as (in, out) — i.e. PyTorch weight.T — so kernel does x @ W.
    w1 = jax.random.uniform(k1, (IN_FEATURES, HIDDEN), jnp.float32, -lim1, lim1)
    b1 = jax.random.uniform(k2, (1, HIDDEN), jnp.float32, -lim1, lim1)
    w2 = jax.random.uniform(k3, (HIDDEN, OUT_FEATURES), jnp.float32, -lim2, lim2)
    b2 = jax.random.uniform(k4, (1, OUT_FEATURES), jnp.float32, -lim2, lim2)
    return w1, b1, w2, b2


if __name__ == "__main__":
    key = jax.random.PRNGKey(0)
    kx, kp = jax.random.split(key)

    # Small-but-tiled test batch: 512 rows, TB=128 -> grid of 4 steps so the
    # batch-tiled pipeline actually exercises multiple grid iterations.
    B = 512
    x = jax.random.normal(kx, (B, IN_FEATURES), dtype=jnp.float32)
    w1, b1, w2, b2 = init_params(kp)

    # --- Pallas path, f32 compute (tight correctness check) ---
    y_f32 = net1_forward_pallas(
        x, w1, b1, w2, b2, block_b=128, compute_dtype=jnp.float32
    )
    y_f32 = jax.block_until_ready(y_f32)

    h_ref = jnp.maximum(x @ w1 + b1, 0.0)
    y_ref = h_ref @ w2 + b2
    assert y_f32.shape == (B, OUT_FEATURES)
    assert jnp.allclose(y_f32, y_ref, atol=1e-5, rtol=1e-5)

    # --- Pallas path, bf16 compute (default production config) ---
    y_bf16 = net1_forward_pallas(
        x, w1, b1, w2, b2, block_b=128, compute_dtype=jnp.bfloat16
    )
    y_bf16 = jax.block_until_ready(y_bf16)

    xb, w1b, w2b = (x.astype(jnp.bfloat16), w1.astype(jnp.bfloat16),
                    w2.astype(jnp.bfloat16))
    h_bref = jnp.maximum(
        jnp.dot(xb, w1b, preferred_element_type=jnp.float32) + b1, 0.0
    ).astype(jnp.bfloat16)
    y_bref = jnp.dot(h_bref, w2b, preferred_element_type=jnp.float32) + b2
    assert jnp.allclose(y_bf16, y_bref, atol=2e-2, rtol=2e-2)

    # --- tiny-batch dispatcher path (plain XLA, no Pallas launch) ---
    x_small = x[:8]
    y_small = jax.block_until_ready(net1_forward(x_small, w1, b1, w2, b2))
    assert jnp.allclose(y_small, y_ref[:8], atol=1e-5, rtol=1e-5)

    print("KERNEL_OK")
</pallas_src>

<mosaic_0001>
module attributes {stable_mosaic.version = 11 : i64} {
  func.func @_net1_kernel(%arg0: i32, %arg1: memref<128x15xf32, #tpu.memory_space<vmem>>, %arg2: memref<15x4xf32, #tpu.memory_space<vmem>>, %arg3: memref<1x4xf32, #tpu.memory_space<vmem>>, %arg4: memref<4x2xf32, #tpu.memory_space<vmem>>, %arg5: memref<1x2xf32, #tpu.memory_space<vmem>>, %arg6: memref<128x2xf32, #tpu.memory_space<vmem>>) attributes {dimension_semantics = [#tpu.dimension_semantics<parallel>], iteration_bounds = array<i64: 4>, scalar_prefetch = 0 : i64, scratch_operands = 0 : i64, tpu.core_type = #tpu.core_type<tc>, window_params = [{transform_indices = @transform_0, window_bounds = array<i64: 128, 15>}, {pipeline_mode = #tpu.pipeline_mode<synchronous>, transform_indices = @transform_1, window_bounds = array<i64: 15, 4>}, {pipeline_mode = #tpu.pipeline_mode<synchronous>, transform_indices = @transform_2, window_bounds = array<i64: 1, 4>}, {pipeline_mode = #tpu.pipeline_mode<synchronous>, transform_indices = @transform_3, window_bounds = array<i64: 4, 2>}, {pipeline_mode = #tpu.pipeline_mode<synchronous>, transform_indices = @transform_4, window_bounds = array<i64: 1, 2>}, {transform_indices = @transform_5, window_bounds = array<i64: 128, 2>}]} {
    %c0 = arith.constant 0 : index
    %c0_0 = arith.constant 0 : index
    %0 = vector.load %arg1[%c0, %c0_0] : memref<128x15xf32, #tpu.memory_space<vmem>>, vector<128x15xf32>
    %c0_1 = arith.constant 0 : index
    %c0_2 = arith.constant 0 : index
    %1 = vector.load %arg2[%c0_1, %c0_2] : memref<15x4xf32, #tpu.memory_space<vmem>>, vector<15x4xf32>
    %cst = arith.constant dense<0.000000e+00> : vector<128x4xf32>
    %2 = tpu.matmul %0, %1, %cst {dimension_numbers = #tpu.dot_dimension_numbers<[1], [0], [0], [1], [0, 0, 1, 1], [], []>} : vector<128x15xf32>, vector<15x4xf32>, vector<128x4xf32> -> vector<128x4xf32>
    %c0_3 = arith.constant 0 : index
    %c0_4 = arith.constant 0 : index
    %3 = vector.load %arg3[%c0_3, %c0_4] : memref<1x4xf32, #tpu.memory_space<vmem>>, vector<1x4xf32>
    %4 = vector.broadcast %3 : vector<1x4xf32> to vector<128x4xf32>
    %5 = arith.addf %2, %4 : vector<128x4xf32>
    %cst_5 = arith.constant 0.000000e+00 : f32
    %6 = vector.broadcast %cst_5 : f32 to vector<128x4xf32>
    %7 = arith.maximumf %5, %6 : vector<128x4xf32>
    %c0_6 = arith.constant 0 : index
    %c0_7 = arith.constant 0 : index
    %8 = vector.load %arg4[%c0_6, %c0_7] : memref<4x2xf32, #tpu.memory_space<vmem>>, vector<4x2xf32>
    %cst_8 = arith.constant dense<0.000000e+00> : vector<128x2xf32>
    %9 = tpu.matmul %7, %8, %cst_8 {dimension_numbers = #tpu.dot_dimension_numbers<[1], [0], [0], [1], [0, 0, 1, 1], [], []>} : vector<128x4xf32>, vector<4x2xf32>, vector<128x2xf32> -> vector<128x2xf32>
    %c0_9 = arith.constant 0 : index
    %c0_10 = arith.constant 0 : index
    %10 = vector.load %arg5[%c0_9, %c0_10] : memref<1x2xf32, #tpu.memory_space<vmem>>, vector<1x2xf32>
    %11 = vector.broadcast %10 : vector<1x2xf32> to vector<128x2xf32>
    %12 = arith.addf %9, %11 : vector<128x2xf32>
    %c0_11 = arith.constant 0 : index
    %c0_12 = arith.constant 0 : index
    %13 = vector.load %arg6[%c0_11, %c0_12] : memref<128x2xf32, #tpu.memory_space<vmem>>, vector<128x2xf32>
    tpu.vector_store %arg6[%c0_11, %c0_12], %12 {strides = array<i32>} : memref<128x2xf32, #tpu.memory_space<vmem>>, vector<128x2xf32>,
    return
  }
  func.func @transform_0(%arg0: i32) -> (i32, i32) {
    %c0_i32 = arith.constant 0 : i32
    %c0_i32_0 = arith.constant 0 : i32
    return %arg0, %c0_i32 : i32, i32
  }
  func.func @transform_1(%arg0: i32) -> (i32, i32) {
    %c0_i32 = arith.constant 0 : i32
    %c0_i32_0 = arith.constant 0 : i32
    %c0_i32_1 = arith.constant 0 : i32
    return %c0_i32, %c0_i32_0 : i32, i32
  }
  func.func @transform_2(%arg0: i32) -> (i32, i32) {
    %c0_i32 = arith.constant 0 : i32
    %c0_i32_0 = arith.constant 0 : i32
    %c0_i32_1 = arith.constant 0 : i32
    return %c0_i32, %c0_i32_0 : i32, i32
  }
  func.func @transform_3(%arg0: i32) -> (i32, i32) {
    %c0_i32 = arith.constant 0 : i32
    %c0_i32_0 = arith.constant 0 : i32
    %c0_i32_1 = arith.constant 0 : i32
    return %c0_i32, %c0_i32_0 : i32, i32
  }
  func.func @transform_4(%arg0: i32) -> (i32, i32) {
    %c0_i32 = arith.constant 0 : i32
    %c0_i32_0 = arith.constant 0 : i32
    %c0_i32_1 = arith.constant 0 : i32
    return %c0_i32, %c0_i32_0 : i32, i32
  }
  func.func @transform_5(%arg0: i32) -> (i32, i32) {
    %c0_i32 = arith.constant 0 : i32
    %c0_i32_0 = arith.constant 0 : i32
    return %arg0, %c0_i32 : i32, i32
  }
}

</mosaic_0001>

<bundles_post_ra>
// kernel: tpu_custom_call.1
= control target key start
LH: loop header
LB: loop body
LE: loop exit
PB: predicated region body
PF: predicated region fallthrough
CT: control target
= control target key end

     0   :  { %s936_s18 = smov 0   ;;  %s1059_s0 = inlined_call_operand.vmem [shape: f32[512,15], index: 0, kind: input, shape index: {}]   ;;  %s1060_s1 = inlined_call_operand.vmem [shape: f32[15,4], index: 1, kind: input, shape index: {}]   ;;  %s1061_s2 = inlined_call_operand.vmem [shape: f32[1,4], index: 2, kind: input, shape index: {}]   ;;  %s1062_s3 = inlined_call_operand.vmem [shape: f32[4,2], index: 3, kind: input, shape index: {}]   ;;  %s1063_s4 = inlined_call_operand.vmem [shape: f32[1,2], index: 4, kind: input, shape index: {}]   ;;  %s1064_s5 = inlined_call_operand.vmem [shape: f32[512,2], index: 5, kind: output, shape index: {}]  }
   0x1 LB: > { %s746_s19 = sadd.s32 4294967295, %s903_s18   ;;  %p750_p0 = scmp.ge.s32.totalorder %s903_s18, 1  ;;  %s903_s18 = sphi %s936_s18, %s15_s18  }
   0x2   : > { %p188_p1 = scmp.lt.s32.totalorder %s903_s18, 5 }
   0x4   : > { %p189_p2 = pnand %p750_p0, %p188_p1 }
   0x5   : > { %v244_v0 = vld [vmem:[%s1060_s1] sm:$0xff] (!%p189_p2)  ;;  %v245_v1 = vld [vmem:[%s1060_s1 + $0x8] sm:$0x7f] (!%p189_p2)  ;;  %vm302_vm0 = vcmask (!%p189_p2), 1046528   ;;  %s751_s24 = sshll.u32 (!%p189_p2), %s746_s19, 4  ;;  %vm905_vm1 = vmmov (!%p189_p2), 1  }
   0x6   : > { %192 = sbr.rel (%p189_p2) target bundleno = 480 (0x1e0), region = 40  ;;  %v882_v2 = vpack.c.bf16 (!%p189_p2), %v245_v1, %v244_v0  ;;  %vm883_vm2 = vmpackc.low (!%p189_p2), %vm302_vm0, %vm905_vm1  ;;  %p217_p3 = scmp.lt.s32.totalorder (!%p189_p2), %s751_s24, 63  ;;  %vm253_vm3 = vcmask (!%p189_p2), 121856   ;;  %v467_v19 = vld [vmem:[%s1062_s3] sm:$0xf] (!%p189_p2)  ;;  %vm524_vm4 = vcmask (!%p189_p2), 1043456  }
   0x7   : > { %856 = vmatprep.subr.msk.mxu1 (!%p189_p2), %vm524_vm4, %v467_v19  ;;  %v755_v20 = vld [vmem:[%s1061_s2] ss:$0 sm:$0xff] (!%p189_p2)  ;;  %vm475_vm5 = vcmask (!%p189_p2), 31744   ;;  %vm673_vm6 = vcmask (!%p189_p2), 15360  }
   0x8   : > { %884 = vmatprep.subr.msk.bf16.mxu0 (!%p189_p2), %vm883_vm2, %v882_v2  ;;  %857 = vmatpush3.msk.msra.mxu1 (!%p189_p2), %vm524_vm4, %v467_v19 }
   0x9   : > { %887 = vmatpush3.bf16.msk.msra.mxu0 (!%p189_p2), %vm883_vm2, %v882_v2 }
   0xd   : > { %s1066_s24 = smov (!%p217_p3, %s751_s24), 63 }
   0xe   : > { %s752_s25 = sshll.u32 %s1066_s24, 3 }
   0xf   : > { %s958_s28 = scalar_lea.vmem %s1059_s0, %s752_s25  ;;  %s1022_s12 = scalar_lea.vmem %s1064_s5, %s752_s25 }
  0x10   : > { %v228_v3 = vld [vmem:[%s958_s28] sm:$0xff]  ;;  %v229_v4 = vld [vmem:[%s958_s28 + $0x8] sm:$0xff]  ;;  %v230_v5 = vld [vmem:[%s958_s28 + $0x10] sm:$0xff] }
  0x11   : > { %832 = vmatprep.mubr.msk.f32.mxu0 %vm253_vm3, %v228_v3  ;;  %v231_v6 = vld [vmem:[%s958_s28 + $0x18] sm:$0xff]  ;;  %v232_v7 = vld [vmem:[%s958_s28 + $0x20] sm:$0xff]  ;;  %v233_v8 = vld [vmem:[%s958_s28 + $0x28] sm:$0xff] }
  0x12   : > { %833 = vmatmul.mubr.msk.f32.vlgmr.msra.gmra.mrb[0].mxu0 %vm253_vm3, %v229_v4  ;;  %v234_v9 = vld [vmem:[%s958_s28 + $0x30] sm:$0xff]  ;;  %v235_v10 = vld [vmem:[%s958_s28 + $0x38] sm:$0xff]  ;;  %v236_v11 = vld [vmem:[%s958_s28 + $0x40] sm:$0xff] }
  0x13   : > { %835 = vmatprep.mubr.msk.f32.mxu0 %vm253_vm3, %v230_v5  ;;  %v237_v12 = vld [vmem:[%s958_s28 + $0x48] sm:$0xff]  ;;  %v238_v13 = vld [vmem:[%s958_s28 + $0x50] sm:$0xff]  ;;  %v239_v14 = vld [vmem:[%s958_s28 + $0x58] sm:$0xff] }
  0x14   : > { %v240_v15 = vld [vmem:[%s958_s28 + $0x60] sm:$0xff]  ;;  %v241_v16 = vld [vmem:[%s958_s28 + $0x68] sm:$0xff]  ;;  %v242_v17 = vld [vmem:[%s958_s28 + $0x70] sm:$0xff] }
  0x15   : > { %v243_v18 = vld [vmem:[%s958_s28 + $0x78] sm:$0xff]  ;;  %v773_v5 = vld [vmem:[%s1063_s4] ss:$0 sm:$0xff] }
  0x16   : > { %836 = vmatmul.mubr.msk.f32.gmra.mrb[2].mxu0 %vm253_vm3, %v231_v6 }
  0x17   : > { %838 = vmatprep.mubr.msk.f32.mxu0 %vm253_vm3, %v232_v7 }
  0x1a   : > { %839 = vmatmul.mubr.msk.f32.gmra.mrb[4].mxu0 %vm253_vm3, %v233_v8 }
  0x1b   : > { %841 = vmatprep.mubr.msk.f32.mxu0 %vm253_vm3, %v234_v9 }
  0x1e   : > { %842 = vmatmul.mubr.msk.f32.gmra.mrb[6].mxu0 %vm253_vm3, %v235_v10 }
  0x1f   : > { %844 = vmatprep.mubr.msk.f32.mxu0 %vm253_vm3, %v236_v11 }
  0x22   : > { %845 = vmatmul.mubr.msk.f32.gmra.mrb[8].mxu0 %vm253_vm3, %v237_v12 }
  0x23   : > { %847 = vmatprep.mubr.msk.f32.mxu0 %vm253_vm3, %v238_v13 }
  0x26   : > { %848 = vmatmul.mubr.msk.f32.gmra.mrb[10].mxu0 %vm253_vm3, %v239_v14 }
  0x27   : > { %850 = vmatprep.mubr.msk.f32.mxu0 %vm253_vm3, %v240_v15 }
  0x2a   : > { %851 = vmatmul.mubr.msk.f32.gmra.mrb[12].mxu0 %vm253_vm3, %v241_v16 }
  0x2b   : > { %853 = vmatprep.mubr.msk.f32.mxu0 %vm253_vm3, %v242_v17 }
  0x2e   : > { %854 = vmatmul.mubr.msk.f32.gmra.mrb[14].mxu0 %vm253_vm3, %v243_v18 }
  0xe5   : > { %v834_v21 = vpop.f32.mrb[0].mxu0 }
  0xe6   : > { %v378_v22 = vadd.f32 %v834_v21, %v755_v20  ;;  %v372_v23 = vpop.f32.mrb[1].mxu0 }
  0xe7   : > { %v373_v24 = vadd.f32 %v755_v20, %v372_v23 }
  0xe8   : > { %v452_v27 = vmax.f32 %v378_v22, 0.0 }
  0xe9   : > { %v451_v25 = vmax.f32 %v373_v24, 0.0  ;;  %v837_v26 = vpop.f32.mrb[2].mxu0 }
  0xea   : > { %v388_v28 = vadd.f32 %v837_v26, %v755_v20  ;;  %v382_v29 = vpop.f32.mrb[3].mxu0 }
  0xeb   : > { %v383_v30 = vadd.f32 %v755_v20, %v382_v29  ;;  %858 = vmatprep.mubr.msk.f32.mxu1 %vm475_vm5, %v451_v25 }
  0xec   : > { %859 = vmatmul.mubr.msk.f32.vlgmr.msra.gmra.mrb[0].mxu1 %vm475_vm5, %v452_v27  ;;  %v454_v33 = vmax.f32 %v388_v28, 0.0 }
  0xed   : > { %v453_v31 = vmax.f32 %v383_v30, 0.0  ;;  %v840_v32 = vpop.f32.mrb[4].mxu0 }
  0xee   : > { %v398_v34 = vadd.f32 %v840_v32, %v755_v20  ;;  %v392_v35 = vpop.f32.mrb[5].mxu0 }
  0xef   : > { %v393_v36 = vadd.f32 %v755_v20, %v392_v35  ;;  %861 = vmatprep.mubr.msk.f32.mxu1 %vm475_vm5, %v453_v31 }
  0xf0   : > { %862 = vmatmul.mubr.msk.f32.gmra.mrb[2].mxu1 %vm475_vm5, %v454_v33  ;;  %v456_v39 = vmax.f32 %v398_v34, 0.0 }
  0xf1   : > { %v455_v37 = vmax.f32 %v393_v36, 0.0  ;;  %v843_v38 = vpop.f32.mrb[6].mxu0 }
  0xf2   : > { %v408_v40 = vadd.f32 %v843_v38, %v755_v20  ;;  %v402_v41 = vpop.f32.mrb[7].mxu0 }
  0xf3   : > { %v403_v42 = vadd.f32 %v755_v20, %v402_v41  ;;  %864 = vmatprep.mubr.msk.f32.mxu1 %vm475_vm5, %v455_v37 }
  0xf4   : > { %865 = vmatmul.mubr.msk.f32.gmra.mrb[4].mxu1 %vm475_vm5, %v456_v39  ;;  %v458_v45 = vmax.f32 %v408_v40, 0.0 }
  0xf5   : > { %v457_v43 = vmax.f32 %v403_v42, 0.0  ;;  %v846_v44 = vpop.f32.mrb[8].mxu0 }
  0xf6   : > { %v418_v46 = vadd.f32 %v846_v44, %v755_v20  ;;  %v412_v47 = vpop.f32.mrb[9].mxu0 }
  0xf7   : > { %v413_v48 = vadd.f32 %v755_v20, %v412_v47  ;;  %867 = vmatprep.mubr.msk.f32.mxu1 %vm475_vm5, %v457_v43 }
  0xf8   : > { %868 = vmatmul.mubr.msk.f32.gmra.mrb[6].mxu1 %vm475_vm5, %v458_v45  ;;  %v460_v51 = vmax.f32 %v418_v46, 0.0 }
  0xf9   : > { %v459_v49 = vmax.f32 %v413_v48, 0.0  ;;  %v849_v50 = vpop.f32.mrb[10].mxu0 }
  0xfa   : > { %v428_v52 = vadd.f32 %v849_v50, %v755_v20  ;;  %v422_v53 = vpop.f32.mrb[11].mxu0 }
  0xfb   : > { %v423_v54 = vadd.f32 %v755_v20, %v422_v53  ;;  %870 = vmatprep.mubr.msk.f32.mxu1 %vm475_vm5, %v459_v49 }
  0xfc   : > { %871 = vmatmul.mubr.msk.f32.gmra.mrb[8].mxu1 %vm475_vm5, %v460_v51  ;;  %v462_v57 = vmax.f32 %v428_v52, 0.0 }
  0xfd   : > { %v461_v55 = vmax.f32 %v423_v54, 0.0  ;;  %v852_v56 = vpop.f32.mrb[12].mxu0 }
  0xfe   : > { %v438_v58 = vadd.f32 %v852_v56, %v755_v20  ;;  %v432_v59 = vpop.f32.mrb[13].mxu0 }
  0xff   : > { %v433_v60 = vadd.f32 %v755_v20, %v432_v59  ;;  %873 = vmatprep.mubr.msk.f32.mxu1 %vm475_vm5, %v461_v55 }
 0x100   : > { %874 = vmatmul.mubr.msk.f32.gmra.mrb[10].mxu1 %vm475_vm5, %v462_v57  ;;  %v464_v63 = vmax.f32 %v438_v58, 0.0 }
 0x101   : > { %v463_v61 = vmax.f32 %v433_v60, 0.0  ;;  %v855_v62 = vpop.f32.mrb[14].mxu0 }
 0x102   : > { %v448_v0 = vadd.f32 %v855_v62, %v755_v20  ;;  %v442_v1 = vpop.f32.mrb[15].mxu0 }
 0x103   : > { %v443_v2 = vadd.f32 %v755_v20, %v442_v1  ;;  %876 = vmatprep.mubr.msk.f32.mxu1 %vm475_vm5, %v463_v61 }
 0x104   : > { %877 = vmatmul.mubr.msk.f32.gmra.mrb[12].mxu1 %vm475_vm5, %v464_v63  ;;  %v466_v4 = vmax.f32 %v448_v0, 0.0 }
 0x105   : > { %v465_v3 = vmax.f32 %v443_v2, 0.0 }
 0x107   : > { %879 = vmatprep.mubr.msk.f32.mxu1 %vm475_vm5, %v465_v3 }
 0x108   : > { %880 = vmatmul.mubr.msk.f32.gmra.mrb[14].mxu1 %vm475_vm5, %v466_v4 }
 0x1bf   : > { %v860_v6 = vpop.f32.mrb[0].mxu1 }
 0x1c0   : > { %v600_v7 = vadd.f32 %v860_v6, %v773_v5  ;;  %v594_v8 = vpop.f32.mrb[1].mxu1 }
 0x1c1   : > { %v595_v9 = vadd.f32 %v773_v5, %v594_v8 }
 0x1c2   : > { %675 = vst.msk [vmem:[%s1022_s12 + $0x8] sm:$0xff] %vm673_vm6, %v600_v7 }
 0x1c3   : > { %674 = vst.msk [vmem:[%s1022_s12] sm:$0xff] %vm673_vm6, %v595_v9  ;;  %v863_v10 = vpop.f32.mrb[2].mxu1 }
 0x1c4   : > { %v610_v11 = vadd.f32 %v863_v10, %v773_v5  ;;  %v604_v12 = vpop.f32.mrb[3].mxu1 }
 0x1c5   : > { %v605_v13 = vadd.f32 %v773_v5, %v604_v12 }
 0x1c6   : > { %677 = vst.msk [vmem:[%s1022_s12 + $0x18] sm:$0xff] %vm673_vm6, %v610_v11 }
 0x1c7   : > { %676 = vst.msk [vmem:[%s1022_s12 + $0x10] sm:$0xff] %vm673_vm6, %v605_v13  ;;  %v866_v14 = vpop.f32.mrb[4].mxu1 }
 0x1c8   : > { %v620_v15 = vadd.f32 %v866_v14, %v773_v5  ;;  %v614_v16 = vpop.f32.mrb[5].mxu1 }
 0x1c9   : > { %v615_v17 = vadd.f32 %v773_v5, %v614_v16 }
 0x1ca   : > { %679 = vst.msk [vmem:[%s1022_s12 + $0x28] sm:$0xff] %vm673_vm6, %v620_v15 }
 0x1cb   : > { %678 = vst.msk [vmem:[%s1022_s12 + $0x20] sm:$0xff] %vm673_vm6, %v615_v17  ;;  %v869_v18 = vpop.f32.mrb[6].mxu1 }
 0x1cc   : > { %v630_v19 = vadd.f32 %v869_v18, %v773_v5  ;;  %v624_v20 = vpop.f32.mrb[7].mxu1 }
 0x1cd   : > { %v625_v21 = vadd.f32 %v773_v5, %v624_v20 }
 0x1ce   : > { %681 = vst.msk [vmem:[%s1022_s12 + $0x38] sm:$0xff] %vm673_vm6, %v630_v19 }
 0x1cf   : > { %680 = vst.msk [vmem:[%s1022_s12 + $0x30] sm:$0xff] %vm673_vm6, %v625_v21  ;;  %v872_v22 = vpop.f32.mrb[8].mxu1 }
 0x1d0   : > { %v640_v23 = vadd.f32 %v872_v22, %v773_v5  ;;  %v634_v24 = vpop.f32.mrb[9].mxu1 }
 0x1d1   : > { %v635_v25 = vadd.f32 %v773_v5, %v634_v24 }
 0x1d2   : > { %683 = vst.msk [vmem:[%s1022_s12 + $0x48] sm:$0xff] %vm673_vm6, %v640_v23 }
 0x1d3   : > { %682 = vst.msk [vmem:[%s1022_s12 + $0x40] sm:$0xff] %vm673_vm6, %v635_v25  ;;  %v875_v26 = vpop.f32.mrb[10].mxu1 }
 0x1d4   : > { %v650_v27 = vadd.f32 %v875_v26, %v773_v5  ;;  %v644_v28 = vpop.f32.mrb[11].mxu1 }
 0x1d5   : > { %v645_v29 = vadd.f32 %v773_v5, %v644_v28 }
 0x1d6   : > { %685 = vst.msk [vmem:[%s1022_s12 + $0x58] sm:$0xff] %vm673_vm6, %v650_v27 }
 0x1d7   : > { %684 = vst.msk [vmem:[%s1022_s12 + $0x50] sm:$0xff] %vm673_vm6, %v645_v29  ;;  %v878_v30 = vpop.f32.mrb[12].mxu1 }
 0x1d8   : > { %v660_v31 = vadd.f32 %v878_v30, %v773_v5  ;;  %v654_v32 = vpop.f32.mrb[13].mxu1 }
 0x1d9   : > { %v655_v33 = vadd.f32 %v773_v5, %v654_v32 }
 0x1da   : > { %687 = vst.msk [vmem:[%s1022_s12 + $0x68] sm:$0xff] %vm673_vm6, %v660_v31 }
 0x1db   : > { %686 = vst.msk [vmem:[%s1022_s12 + $0x60] sm:$0xff] %vm673_vm6, %v655_v33  ;;  %v881_v34 = vpop.f32.mrb[14].mxu1 }
 0x1dc   : > { %v670_v35 = vadd.f32 %v881_v34, %v773_v5  ;;  %v664_v36 = vpop.f32.mrb[15].mxu1 }
 0x1dd   : > { %v665_v37 = vadd.f32 %v773_v5, %v664_v36 }
 0x1de   : > { %689 = vst.msk [vmem:[%s1022_s12 + $0x78] sm:$0xff] %vm673_vm6, %v670_v35 }
 0x1df   : > { %688 = vst.msk [vmem:[%s1022_s12 + $0x70] sm:$0xff] %vm673_vm6, %v665_v37 }
 0x1e0 PF: > { %s15_s18 = sadd.s32 1, %s903_s18  }
 0x1e1   : > { %p12_p4 = scmp.ge.s32.totalorder %s15_s18, 6  }
 0x1e3   :  { %14 = sbr.rel (!%p12_p4) target bundleno = 1 (0x1), region = 70 }

</bundles_post_ra>
